<compile_context>
chip_gen: v5e
topology: v5e:2x2
jax: 0.10.0
libtpu: 0.0.40
codegen_flags: <defaults>
</compile_context>

<pallas_src>
import jax
import jax.numpy as jnp
from jax import lax
from jax.experimental import pallas as pl
from jax.experimental.pallas import tpu as pltpu

_VMEM_LIMIT = 32 * 1024 * 1024  # safe on v5e/v6e/v7x; raises v5e's 16 MiB default


# ------------------------------------------------------------------ tiled linear kernel

def _linear_kernel(x_ref, wt_ref, b_ref, o_ref, acc_ref):
    # y = x @ W^T + b  (F.linear semantics; W^T precomputed at init)
    @pl.when(pl.program_id(2) == 0)
    def _():
        acc_ref[...] = jnp.zeros_like(acc_ref)

    acc_ref[...] += jnp.dot(x_ref[...], wt_ref[...], preferred_element_type=jnp.float32)

    @pl.when(pl.program_id(2) == pl.num_programs(2) - 1)
    def _():
        o_ref[...] = (acc_ref[...] + b_ref[...]).astype(o_ref.dtype)


def _pick_tile(dim, candidates):
    for c in candidates:
        if dim >= c and dim % c == 0:
            return c
    return dim


def pallas_linear_t(x, wt, b):
    """x: (M, K), wt: (K, N) (already transposed), b: (N,) -> (M, N)."""
    m, k = x.shape
    _, n = wt.shape
    tm = _pick_tile(m, (256, 128))
    tn = _pick_tile(n, (256, 128))
    tk = _pick_tile(k, (512, 256, 128))
    b2 = b.reshape(1, n)
    return pl.pallas_call(
        _linear_kernel,
        out_shape=jax.ShapeDtypeStruct((m, n), x.dtype),
        grid_spec=pltpu.PrefetchScalarGridSpec(
            num_scalar_prefetch=0,
            grid=(m // tm, n // tn, k // tk),
            in_specs=[
                pl.BlockSpec((tm, tk), lambda i, j, kk: (i, kk)),
                pl.BlockSpec((tk, tn), lambda i, j, kk: (kk, j)),
                pl.BlockSpec((1, tn), lambda i, j, kk: (0, j)),
            ],
            out_specs=pl.BlockSpec((tm, tn), lambda i, j, kk: (i, j)),
            scratch_shapes=[pltpu.VMEM((tm, tn), jnp.float32)],
        ),
        compiler_params=pltpu.CompilerParams(
            dimension_semantics=("parallel", "parallel", "arbitrary"),
            vmem_limit_bytes=_VMEM_LIMIT,
        ),
    )(x, wt, b2)


# ------------------------------------------------------------------ fused attention kernel

def _make_mhca_kernel(num_heads, head_dim):
    def kernel(q_ref, k_ref, v_ref, scale_ref, bias_ref, o_ref, map_ref):
        q = q_ref[0]          # (Lq, E)
        k = k_ref[0]          # (S,  E)
        v = v_ref[0]          # (S,  E)
        scale = scale_ref[0]  # (1, S)  per-modality length scaling
        bias = bias_ref[0]    # (1, S)  0 / -inf padding mask

        acc_map = None
        ctxs = []
        for h in range(num_heads):            # static unroll over heads
            lo = h * head_dim
            hi = lo + head_dim
            qh = q[:, lo:hi]                  # (Lq, hd)
            kh = k[:, lo:hi]                  # (S,  hd)
            vh = v[:, lo:hi]                  # (S,  hd)
            # NT contraction — no transpose of the K tile
            s = lax.dot_general(qh, kh, (((1,), (1,)), ((), ())),
                                preferred_element_type=jnp.float32)   # (Lq, S)
            s = s * scale + bias
            m = jnp.max(s, axis=-1, keepdims=True)
            e = jnp.exp(s - m)
            l = jnp.sum(e, axis=-1, keepdims=True)
            p = e * (1.0 / l)                 # softmax over keys
            acc_map = p if acc_map is None else acc_map + p
            ctxs.append(jnp.dot(p, vh, preferred_element_type=jnp.float32))

        # lane-dense (Lq, E) output slab; heads merged in-kernel
        o_ref[0] = jnp.concatenate(ctxs, axis=-1).astype(o_ref.dtype)
        # head-averaged attention map computed in-kernel (num_heads x less HBM writeback)
        map_ref[0] = (acc_map * (1.0 / num_heads)).astype(map_ref.dtype)

    return kernel


def pallas_fused_mhca(q, k, v, scale, bias, num_heads, head_dim):
    """q: (B, Lq, E); k,v: (B, S, E); scale,bias: (B, 1, S) ->
       attn (B, Lq, E), head-averaged map (B, Lq, S)."""
    b_sz, lq, e = q.shape
    s_len = k.shape[1]
    kernel = _make_mhca_kernel(num_heads, head_dim)
    return pl.pallas_call(
        kernel,
        out_shape=(
            jax.ShapeDtypeStruct((b_sz, lq, e), q.dtype),
            jax.ShapeDtypeStruct((b_sz, lq, s_len), jnp.float32),
        ),
        grid=(b_sz,),
        in_specs=[
            pl.BlockSpec((1, lq, e), lambda i: (i, 0, 0)),
            pl.BlockSpec((1, s_len, e), lambda i: (i, 0, 0)),
            pl.BlockSpec((1, s_len, e), lambda i: (i, 0, 0)),
            pl.BlockSpec((1, 1, s_len), lambda i: (i, 0, 0)),
            pl.BlockSpec((1, 1, s_len), lambda i: (i, 0, 0)),
        ],
        out_specs=(
            pl.BlockSpec((1, lq, e), lambda i: (i, 0, 0)),
            pl.BlockSpec((1, lq, s_len), lambda i: (i, 0, 0)),
        ),
        compiler_params=pltpu.CompilerParams(
            dimension_semantics=("parallel",),
            vmem_limit_bytes=_VMEM_LIMIT,
        ),
    )(q, k, v, scale, bias)


# ------------------------------------------------------------------ Module (JAX glue)

class MCAttentionPallas:
    def __init__(self, embed_dim, num_heads, key):
        self.embed_dim = embed_dim
        self.num_heads = num_heads
        self.head_dim = embed_dim // num_heads
        assert self.head_dim * num_heads == embed_dim
        self.scaling = self.head_dim ** (-0.5)

        def xavier(k, shape):
            fan_out, fan_in = shape
            bound = (6.0 / (fan_in + fan_out)) ** 0.5
            return jax.random.uniform(k, shape, jnp.float32, -bound, bound)

        ks = jax.random.split(key, 6)
        e = embed_dim
        # raw parameters (PyTorch layout) — used by the pure-JAX reference
        self.in_w_a = xavier(ks[0], (3 * e, e))
        self.in_w_v = xavier(ks[1], (3 * e, e))
        self.in_w_l = xavier(ks[2], (3 * e, e))
        self.in_b_a = jnp.zeros((3 * e,), jnp.float32)
        self.in_b_v = jnp.zeros((3 * e,), jnp.float32)
        self.in_b_l = jnp.zeros((3 * e,), jnp.float32)
        self.out_w_a = xavier(ks[3], (e, e))
        self.out_w_v = xavier(ks[4], (e, e))
        self.out_w_l = xavier(ks[5], (e, e))
        self.out_b_a = jnp.zeros((e,), jnp.float32)
        self.out_b_v = jnp.zeros((e,), jnp.float32)
        self.out_b_l = jnp.zeros((e,), jnp.float32)

        # derived constants for the Pallas path: transposed weights with the
        # q-scaling (head_dim**-0.5) folded into the Q columns — free at init,
        # removes a per-call HBM transpose and a Q-sized scaling pass.
        def fold(w, b):
            wt = w.T  # (E, 3E)
            wt = wt.at[:, :e].multiply(self.scaling)
            bf = b.at[:e].multiply(self.scaling)
            return wt, bf

        self.in_wt_a, self.in_bf_a = fold(self.in_w_a, self.in_b_a)
        self.in_wt_v, self.in_bf_v = fold(self.in_w_v, self.in_b_v)
        self.in_wt_l, self.in_bf_l = fold(self.in_w_l, self.in_b_l)
        self.out_wt_a = self.out_w_a.T
        self.out_wt_v = self.out_w_v.T
        self.out_wt_l = self.out_w_l.T

    # ---- helpers ------------------------------------------------------------
    @staticmethod
    def generate_len_scale_mask(padding_masks):
        parts = []
        for m in padding_masks:
            bsz, max_len = m.shape
            len_scaling = jnp.sum(jnp.logical_not(m), axis=1).astype(jnp.float32) ** (-0.5)
            parts.append(jnp.broadcast_to(len_scaling[:, None], (bsz, max_len)))
        return jnp.concatenate(parts, axis=1)

    # ---- forward ------------------------------------------------------------
    def __call__(self, inputs, input_padding_masks):
        audio, vision, text = inputs
        e = self.embed_dim
        bsz = audio.shape[1]
        seq_lens = (audio.shape[0], vision.shape[0], text.shape[0])

        def in_proj(x, wt, bf):
            L = x.shape[0]
            y = pallas_linear_t(x.reshape(L * bsz, e), wt, bf).reshape(L, bsz, 3 * e)
            return jnp.split(y, 3, axis=-1)    # Q (pre-scaled), K, V each (L, B, E)

        Qa, Ka, Va = in_proj(audio, self.in_wt_a, self.in_bf_a)
        Qv, Kv, Vv = in_proj(vision, self.in_wt_v, self.in_bf_v)
        Ql, Kl, Vl = in_proj(text, self.in_wt_l, self.in_bf_l)

        # fuse the three modality attentions: shared K/V streamed once,
        # queries concatenated along the query axis
        q_all = jnp.concatenate([Qa, Qv, Ql], axis=0).transpose(1, 0, 2)   # (B, Lq, E)
        k_all = jnp.concatenate([Ka, Kv, Kl], axis=0).transpose(1, 0, 2)   # (B, S,  E)
        v_all = jnp.concatenate([Va, Vv, Vl], axis=0).transpose(1, 0, 2)   # (B, S,  E)

        pm = jnp.concatenate(input_padding_masks, axis=1)                  # (B, S)
        bias = jnp.where(pm, -jnp.inf, 0.0).astype(jnp.float32)[:, None, :]
        scale = self.generate_len_scale_mask(input_padding_masks)[:, None, :]

        attn, amap = pallas_fused_mhca(q_all, k_all, v_all, scale, bias,
                                       self.num_heads, self.head_dim)
        # attn: (B, Lq_total, E); amap: (B, Lq_total, S), already head-averaged

        out_w = (self.out_wt_a, self.out_wt_v, self.out_wt_l)
        out_b = (self.out_b_a, self.out_b_v, self.out_b_l)
        outs, maps = [], []
        off = 0
        for L, wt, b in zip(seq_lens, out_w, out_b):
            a_m = attn[:, off:off + L]                                     # (B, L, E)
            y = pallas_linear_t(a_m.reshape(bsz * L, e), wt, b)
            outs.append(y.reshape(bsz, L, e).transpose(1, 0, 2))           # (L, B, E)
            maps.append(amap[:, off:off + L])                              # (B, L, S)
            off += L
        return tuple(outs), tuple(maps)


# ------------------------------------------------------------------ pure-JAX reference

def reference_forward(mod, inputs, masks):
    def in_proj(x, w, b):
        L, B, E = x.shape
        y = x @ w.T + b
        q, k, v = jnp.split(y, 3, axis=-1)
        q = q * mod.scaling
        f = lambda t: t.reshape(L, B * mod.num_heads, mod.head_dim).transpose(1, 0, 2)
        return f(q), f(k), f(v)

    audio, vision, text = inputs
    bsz = audio.shape[1]
    Qa, Ka, Va = in_proj(audio, mod.in_w_a, mod.in_b_a)
    Qv, Kv, Vv = in_proj(vision, mod.in_w_v, mod.in_b_v)
    Ql, Kl, Vl = in_proj(text, mod.in_w_l, mod.in_b_l)
    K = jnp.concatenate([Ka, Kv, Kl], axis=1)
    V = jnp.concatenate([Va, Vv, Vl], axis=1)
    pm = jnp.concatenate(masks, axis=1)
    sm = MCAttentionPallas.generate_len_scale_mask(masks)

    def mhca(q, ow, ob):
        bh, tgt, hd = q.shape
        src = K.shape[1]
        aw = jnp.einsum('btd,bsd->bts', q, K)
        bias = jnp.where(pm, -jnp.inf, 0.0)[:, None, None, :]
        bias = jnp.broadcast_to(bias, (bsz, mod.num_heads, 1, src)).reshape(bh, 1, src)
        sc = jnp.broadcast_to(sm[:, None, None, :], (bsz, mod.num_heads, 1, src)).reshape(bh, 1, src)
        aw = jax.nn.softmax(aw * sc + bias, axis=-1)
        attn = jnp.einsum('bts,bsd->btd', aw, V)
        attn = attn.transpose(1, 0, 2).reshape(tgt, bsz, mod.embed_dim)
        amap = aw.reshape(bsz, mod.num_heads, tgt, src).sum(1) / mod.num_heads
        attn = attn @ ow.T + ob
        return attn, amap

    ra, ma = mhca(Qa, mod.out_w_a, mod.out_b_a)
    rv, mv = mhca(Qv, mod.out_w_v, mod.out_b_v)
    rl, ml = mhca(Ql, mod.out_w_l, mod.out_b_l)
    return (ra, rv, rl), (ma, mv, ml)


# ------------------------------------------------------------------ main

if __name__ == "__main__":
    embed_dim, num_heads, bsz = 32, 4, 2
    L_a = L_v = L_l = 8

    root = jax.random.PRNGKey(0)
    k_param, k_a, k_v, k_l = jax.random.split(root, 4)
    mod = MCAttentionPallas(embed_dim, num_heads, k_param)

    audio = jax.random.normal(k_a, (L_a, bsz, embed_dim), jnp.float32)
    vision = jax.random.normal(k_v, (L_v, bsz, embed_dim), jnp.float32)
    text = jax.random.normal(k_l, (L_l, bsz, embed_dim), jnp.float32)

    pad_a = jnp.array([[False] * 8, [False] * 6 + [True] * 2], dtype=bool)
    pad_v = jnp.zeros((bsz, L_v), dtype=bool)
    pad_l = jnp.array([[False] * 7 + [True], [False] * 8], dtype=bool)

    inputs = (audio, vision, text)
    masks = (pad_a, pad_v, pad_l)

    (attn_a, attn_v, attn_l), (map_a, map_v, map_l) = mod(inputs, masks)
    jax.block_until_ready((attn_a, attn_v, attn_l, map_a, map_v, map_l))

    (ra, rv, rl), (ma, mv, ml) = reference_forward(mod, inputs, masks)
    for got, ref in [(attn_a, ra), (attn_v, rv), (attn_l, rl),
                     (map_a, ma), (map_v, mv), (map_l, ml)]:
        assert got.shape == ref.shape
        assert jnp.allclose(got, ref, rtol=1e-4, atol=1e-4), "mismatch vs reference"

    print("KERNEL_OK")
</pallas_src>

<mosaic_0001>
module attributes {stable_mosaic.version = 11 : i64} {
  func.func @_linear_kernel(%arg0: i32, %arg1: i32, %arg2: i32, %arg3: memref<16x32xf32, #tpu.memory_space<vmem>>, %arg4: memref<32x96xf32, #tpu.memory_space<vmem>>, %arg5: memref<1x96xf32, #tpu.memory_space<vmem>>, %arg6: memref<16x96xf32, #tpu.memory_space<vmem>>, %arg7: memref<16x96xf32, #tpu.memory_space<vmem>>) attributes {dimension_semantics = [#tpu.dimension_semantics<parallel>, #tpu.dimension_semantics<parallel>, #tpu.dimension_semantics<arbitrary>], iteration_bounds = array<i64: 1, 1, 1>, scalar_prefetch = 0 : i64, scratch_operands = 1 : i64, tpu.core_type = #tpu.core_type<tc>, window_params = [{transform_indices = @transform_0, window_bounds = array<i64: 16, 32>}, {transform_indices = @transform_1, window_bounds = array<i64: 32, 96>}, {transform_indices = @transform_2, window_bounds = array<i64: 1, 96>}, {transform_indices = @transform_3, window_bounds = array<i64: 16, 96>}]} {
    %c0_i32 = arith.constant 0 : i32
    %0 = arith.cmpi eq, %arg2, %c0_i32 : i32
    %1 = arith.extui %0 : i1 to i32
    %c0_i32_0 = arith.constant 0 : i32
    %2 = arith.cmpi ne, %1, %c0_i32_0 : i32
    scf.if %2 {
      %cst_10 = arith.constant 0.000000e+00 : f32
      %12 = vector.broadcast %cst_10 : f32 to vector<16x96xf32>
      %c0_11 = arith.constant 0 : index
      %c0_12 = arith.constant 0 : index
      %13 = vector.load %arg7[%c0_11, %c0_12] : memref<16x96xf32, #tpu.memory_space<vmem>>, vector<16x96xf32>
      tpu.vector_store %arg7[%c0_11, %c0_12], %12 {strides = array<i32>} : memref<16x96xf32, #tpu.memory_space<vmem>>, vector<16x96xf32>,
    } else {
    }
    %c0 = arith.constant 0 : index
    %c0_1 = arith.constant 0 : index
    %3 = vector.load %arg7[%c0, %c0_1] : memref<16x96xf32, #tpu.memory_space<vmem>>, vector<16x96xf32>
    %c0_2 = arith.constant 0 : index
    %c0_3 = arith.constant 0 : index
    %4 = vector.load %arg3[%c0_2, %c0_3] : memref<16x32xf32, #tpu.memory_space<vmem>>, vector<16x32xf32>
    %c0_4 = arith.constant 0 : index
    %c0_5 = arith.constant 0 : index
    %5 = vector.load %arg4[%c0_4, %c0_5] : memref<32x96xf32, #tpu.memory_space<vmem>>, vector<32x96xf32>
    %cst = arith.constant dense<0.000000e+00> : vector<16x96xf32>
    %6 = tpu.matmul %4, %5, %cst {dimension_numbers = #tpu.dot_dimension_numbers<[1], [0], [0], [1], [0, 0, 1, 1], [], []>} : vector<16x32xf32>, vector<32x96xf32>, vector<16x96xf32> -> vector<16x96xf32>
    %7 = arith.addf %3, %6 : vector<16x96xf32>
    %c0_6 = arith.constant 0 : index
    %c0_7 = arith.constant 0 : index
    %8 = vector.load %arg7[%c0_6, %c0_7] : memref<16x96xf32, #tpu.memory_space<vmem>>, vector<16x96xf32>
    tpu.vector_store %arg7[%c0_6, %c0_7], %7 {strides = array<i32>} : memref<16x96xf32, #tpu.memory_space<vmem>>, vector<16x96xf32>,
    %c0_i32_8 = arith.constant 0 : i32
    %9 = arith.cmpi eq, %arg2, %c0_i32_8 : i32
    %10 = arith.extui %9 : i1 to i32
    %c0_i32_9 = arith.constant 0 : i32
    %11 = arith.cmpi ne, %10, %c0_i32_9 : i32
    scf.if %11 {
      %c0_10 = arith.constant 0 : index
      %c0_11 = arith.constant 0 : index
      %12 = vector.load %arg7[%c0_10, %c0_11] : memref<16x96xf32, #tpu.memory_space<vmem>>, vector<16x96xf32>
      %c0_12 = arith.constant 0 : index
      %c0_13 = arith.constant 0 : index
      %13 = vector.load %arg5[%c0_12, %c0_13] : memref<1x96xf32, #tpu.memory_space<vmem>>, vector<1x96xf32>
      %14 = vector.broadcast %13 : vector<1x96xf32> to vector<16x96xf32>
      %15 = arith.addf %12, %14 : vector<16x96xf32>
      %c0_14 = arith.constant 0 : index
      %c0_15 = arith.constant 0 : index
      %16 = vector.load %arg6[%c0_14, %c0_15] : memref<16x96xf32, #tpu.memory_space<vmem>>, vector<16x96xf32>
      tpu.vector_store %arg6[%c0_14, %c0_15], %15 {strides = array<i32>} : memref<16x96xf32, #tpu.memory_space<vmem>>, vector<16x96xf32>,
    } else {
    }
    return
  }
  func.func @transform_0(%arg0: i32, %arg1: i32, %arg2: i32) -> (i32, i32) {
    %c0_i32 = arith.constant 0 : i32
    return %arg0, %arg2 : i32, i32
  }
  func.func @transform_1(%arg0: i32, %arg1: i32, %arg2: i32) -> (i32, i32) {
    %c0_i32 = arith.constant 0 : i32
    return %arg2, %arg1 : i32, i32
  }
  func.func @transform_2(%arg0: i32, %arg1: i32, %arg2: i32) -> (i32, i32) {
    %c0_i32 = arith.constant 0 : i32
    %c0_i32_0 = arith.constant 0 : i32
    return %c0_i32, %arg1 : i32, i32
  }
  func.func @transform_3(%arg0: i32, %arg1: i32, %arg2: i32) -> (i32, i32) {
    %c0_i32 = arith.constant 0 : i32
    return %arg0, %arg1 : i32, i32
  }
}

</mosaic_0001>

<bundles_post_ra>
// kernel: tpu_custom_call.1
= control target key start
LH: loop header
LB: loop body
LE: loop exit
PB: predicated region body
PF: predicated region fallthrough
CT: control target
= control target key end

     0   :  { %8 = vsyncpa [#allocation4], 0  ;;  %s274_s0 = inlined_call_operand.hbm [shape: f32[16,32], index: 0, kind: input, shape index: {}]   ;;  %s275_s1 = inlined_call_operand.hbm [shape: f32[32,96], index: 1, kind: input, shape index: {}]   ;;  %s276_s2 = inlined_call_operand.vmem [shape: f32[1,96], index: 2, kind: input, shape index: {}]   ;;  %s277_s3 = inlined_call_operand.hbm [shape: f32[16,96], index: 3, kind: output, shape index: {}]  }
   0x1   :  { %9 = vsyncpa [#allocation7], 0 }
   0x2   :  { %10 = vsyncpa [#allocation5], 0  ;;  %s15_s14 = sshll.u32 %s274_s0, 4  ;;  %s221_s15 = smov [#allocation3]   ;;  %s16_s14 = int_to_ptr.hbm [resolvable:$true] %s15_s14 }
   0x3   :  { %s17_s16 = sshll.u32 %s221_s15, 4  ;;  %s28_s19 = sshll.u32 %s275_s1, 4  ;;  %s18_s16 = int_to_ptr.vmem [resolvable:$true] %s17_s16  ;;  %s29_s19 = int_to_ptr.hbm [resolvable:$true] %s28_s19 }
   0x4   :  { %s222_s20 = smov 128   ;;  %s223_s21 = smov 8  }
   0x5   :  { %23 = dma.hbm_to_vmem [thread:$0]  %s16_s14, 256, %s18_s16, [#allocation4], %s222_s20, %s222_s20, %s223_s21  }
   0x6   :  { %s224_s22 = smov [#allocation6]  }
   0x7   :  { %s30_s23 = sshll.u32 %s224_s22, 4  ;;  %s31_s23 = int_to_ptr.vmem [resolvable:$true] %s30_s23 }
   0x8   :  { %36 = dma.hbm_to_vmem [thread:$0]  %s29_s19, 512, %s31_s23, [#allocation7], %s222_s20, %s222_s20, %s223_s21  }
   0x9   :  { %215 = dma.done.wait [#allocation4], 256  }
   0xa   :  { %216 = vsyncadd [#allocation4], 4294967040 }
   0xb   :  { %217 = dma.done.wait [#allocation7], 512  }
   0xc   :  { %218 = vsyncadd [#allocation7], 4294966784  ;;  %vm51_vm0 = vcmask 785408   ;;  %v225_v0 = vmov 0.0   ;;  %v61_v1 = vld [vmem:[#allocation6 + $0x18] sm:$0xff]  ;;  %v60_v2 = vld [vmem:[#allocation6 + $0x10] sm:$0xff] }
   0xd   :  { %52 = vst.msk [vmem:[#allocation2] sm:$0xff] %vm51_vm0, %v225_v0  ;;  %81 = vmatpush.msra.mxu0 %v61_v1  ;;  %132 = vmatpush.msra.mxu1 %v61_v1  ;;  %v59_v3 = vld [vmem:[#allocation6 + $0x8] sm:$0xff]  ;;  %v58_v4 = vld [vmem:[#allocation6] sm:$0xff]  ;;  %v56_v5 = vld [vmem:[#allocation3] sm:$0xff]  ;;  %vm62_vm1 = vcmask 261120   ;;  %s226_s24 = smov [#allocation8]  }
   0xe   :  { %53 = vst.msk [vmem:[#allocation2 + $0x8] sm:$0xff] %vm51_vm0, %v225_v0  ;;  %v57_v6 = vld [vmem:[#allocation3 + $0x8] sm:$0xff]  ;;  %v142_v13 = vld [vmem:[%s276_s2] ss:$0 sm:$0xff]  ;;  %s114_s25 = sshll.u32 %s226_s24, 4  ;;  %s116_s28 = sshll.u32 %s277_s3, 4  ;;  %s115_s25 = int_to_ptr.vmem [resolvable:$true] %s114_s25  ;;  %s117_s28 = int_to_ptr.hbm [resolvable:$true] %s116_s28 }
   0xf   :  { %82 = vmatpush.msra.mxu0 %v60_v2  ;;  %133 = vmatpush.msra.mxu1 %v60_v2 }
  0x11   :  { %83 = vmatpush.msra.mxu0 %v59_v3  ;;  %134 = vmatpush.msra.mxu1 %v59_v3 }
  0x13   :  { %84 = vmatpush.msra.mxu0 %v58_v4  ;;  %135 = vmatpush.msra.mxu1 %v58_v4 }
  0x14   :  { %130 = vmatmul.msk.f32.vlgmr.msra.gmra.mxu0 %vm62_vm1, %v56_v5  ;;  %131 = vmatmul.msk.f32.vlgmr.msra.gmra.mxu1 %vm62_vm1, %v57_v6  ;;  %v54_v7 = vld [vmem:[#allocation2] sm:$0xff] }
  0x15   :  { %v55_v8 = vld [vmem:[#allocation2 + $0x8] sm:$0xff] }
  0x91   :  { %v86_v9 = vpop.f32.mrf.mxu0  ;;  %v89_v10 = vpop.f32.mrf.mxu1 }
  0x92   :  { %v92_v11 = vadd.f32 %v86_v9, %v54_v7  ;;  %v93_v12 = vadd.f32 %v89_v10, %v55_v8 }
  0x94   :  { %95 = vst.msk [vmem:[#allocation2] sm:$0xff] %vm51_vm0, %v92_v11 }
  0x95   :  { %96 = vst.msk [vmem:[#allocation2 + $0x8] sm:$0xff] %vm51_vm0, %v93_v12 }
  0x9b   :  { %v100_v14 = vld [vmem:[#allocation2] sm:$0xff] }
  0x9c   :  { %v101_v15 = vld [vmem:[#allocation2 + $0x8] sm:$0xff]  ;;  %v106_v16 = vadd.f32 %v142_v13, %v100_v14 }
  0x9d   :  { %v107_v17 = vadd.f32 %v142_v13, %v101_v15 }
  0x9e   :  { %108 = vst.msk [vmem:[#allocation8] sm:$0xff] %vm51_vm0, %v106_v16 }
  0x9f   :  { %109 = vst.msk [vmem:[#allocation8 + $0x8] sm:$0xff] %vm51_vm0, %v107_v17 }
  0xa0   :  { %122 = dma.vmem_to_hbm [thread:$0]  %s115_s25, 256, %s117_s28, [#allocation5], %s222_s20, %s222_s20, %s223_s21  }
  0xa1   :  { %219 = dma.done.wait [#allocation5], 256  }
  0xa2   :  { %220 = vsyncadd [#allocation5], 4294967040 }
  0xa3   :  { %127 = vsyncpa [#allocation4], 1 }
  0xa4   :  { %128 = vsyncpa [#allocation7], 1 }
  0xa5   :  { %129 = vsyncpa [#allocation5], 1 }

</bundles_post_ra>
